<compile_context>
chip_gen: v5e
topology: v5e:2x2
jax: 0.10.0
libtpu: 0.0.40
codegen_flags: <defaults>
</compile_context>

<pallas_src>
import math

import jax
import jax.numpy as jnp
from jax.experimental import pallas as pl
from jax.experimental.pallas import tpu as pltpu

# dot_general dimension numbers for "A @ B^T" (contract dim 1 of both 2-D operands)
_NT = (((1,), (1,)), ((), ()))


# ----------------------------------------------------------------------------
# Kernels
# ----------------------------------------------------------------------------
def _make_fused_kernel(bb, in0, in1, out0, out1, l_first):
    """Fused kernel for a block of `bb` batch elements.

    Both matmuls are single 2-D MXU dots over the batch-collapsed M dimension.
    Reshapes only merge/split leading dims (lane dim untouched); the minor-dim
    swaps between the two dots are VMEM/XLU work (no HBM round trip).
    NOTE: the leading-dim merges are relayout-free when in0/in1/out0/out1 are
    multiples of 8 (true for the demo shapes).
    """

    def kernel(x_ref, wl_ref, wr_ref, beff_ref, o_ref):
        x = x_ref[...]                       # (bb, in0, in1)
        wl = wl_ref[...]                     # (out0, in0)
        wr = wr_ref[...]                     # (in1, out1)
        cdt = x.dtype                        # compute dtype (matches the module)

        if l_first:
            # z[b] = W_l @ x[b], done transposed so the batch collapses into one dot:
            #   (bb*in1, in0) @ W_l^T -> (bb*in1, out0)
            xt = jnp.swapaxes(x, 1, 2)                               # (bb, in1, in0)
            zt = jax.lax.dot_general(
                xt.reshape(bb * in1, in0), wl, _NT,
                preferred_element_type=jnp.float32)                  # (bb*in1, out0)
            z = jnp.swapaxes(zt.astype(cdt).reshape(bb, in1, out0), 1, 2)
            # y[b] = z[b] @ W_r as one dot over the collapsed batch.
            y = jnp.dot(z.reshape(bb * out0, in1), wr,
                        preferred_element_type=jnp.float32)          # (bb*out0, out1)
            y = y.reshape(bb, out0, out1)
        else:
            # t[b] = x[b] @ W_r as one dot over the collapsed batch.
            t = jnp.dot(x.reshape(bb * in0, in1), wr,
                        preferred_element_type=jnp.float32)          # (bb*in0, out1)
            tt = jnp.swapaxes(t.astype(cdt).reshape(bb, in0, out1), 1, 2)
            # out[b]^T = t[b]^T @ W_l^T as one dot over the collapsed batch.
            ot = jax.lax.dot_general(
                tt.reshape(bb * out1, in0), wl, _NT,
                preferred_element_type=jnp.float32)                  # (bb*out1, out0)
            y = jnp.swapaxes(ot.reshape(bb, out1, out0), 1, 2)       # (bb, out0, out1)

        # bias kept in f32, added once, single final cast.
        o_ref[...] = (y + beff_ref[...][None]).astype(o_ref.dtype)

    return kernel


def _simple_kernel(x_ref, wl_ref, wr_ref, beff_ref, o_ref):
    """Conservative fallback: one batch element per grid step, two 2-D dots."""
    z = jnp.dot(wl_ref[...], x_ref[0], preferred_element_type=jnp.float32)
    y = jnp.dot(z.astype(x_ref.dtype), wr_ref[...],
                preferred_element_type=jnp.float32)
    o_ref[0] = (y + beff_ref[...]).astype(o_ref.dtype)


# ----------------------------------------------------------------------------
# Block-size / VMEM heuristics
# ----------------------------------------------------------------------------
def _vmem_capacity_bytes():
    """Per-core VMEM capacity; conservative default if the query is unavailable."""
    try:
        cap = getattr(pltpu.get_tpu_info(), "vmem_capacity_bytes", None)
        if cap:
            return int(cap)
    except Exception:
        pass
    return 64 * 1024 * 1024        # v7x per-TensorCore VMEM (smallest recent gen)


def _pick_block_batch(B, m_dims, bytes_fixed, bytes_per_b, vmem_budget):
    """Largest divisor of B that fits the VMEM budget, keeping grid >= 2.

    Soft preference for a bb whose collapsed fused-dot M dims (bb*m) are
    128-aligned (fills full MXU rows), unless that costs more than 2x in size.
    """
    if B <= 1:
        return 1
    max_bb = max(1, B // 2)        # keep >= 2 grid steps (megacore + pipeline)
    feasible = [c for c in range(1, max_bb + 1)
                if B % c == 0 and bytes_fixed + c * bytes_per_b <= vmem_budget]
    if not feasible:
        return 1
    best = feasible[-1]
    aligned = [c for c in feasible if all((c * m) % 128 == 0 for m in m_dims)]
    if aligned and 2 * aligned[-1] >= best:
        return aligned[-1]
    return best


# ----------------------------------------------------------------------------
# pallas_call wrappers
# ----------------------------------------------------------------------------
def _forward_fused(x, weight_l, weight_r, bias_eff, block_batch, use_buffered):
    B, in0, in1 = x.shape
    out0, out1 = bias_eff.shape
    itemsize = jnp.dtype(x.dtype).itemsize

    # Association choice: FLOPs first, in-kernel transpose volume as tie-break.
    flops_l = 2 * (out0 * in0 * in1 + out0 * in1 * out1)   # (W_l X) W_r
    flops_r = 2 * (in0 * in1 * out1 + out0 * in0 * out1)   # W_l (X W_r)
    xlu_l = in0 * in1 + out0 * in1                         # elems moved by swaps
    xlu_r = in0 * out1 + out0 * out1
    l_first = (flops_l, xlu_l) <= (flops_r, xlu_r)

    # Generation-aware VMEM budget (v5e/v6e: 128 MiB, v7x: 64 MiB per core).
    cap = _vmem_capacity_bytes()
    budget = min(int(cap * 0.55), 96 * 1024 * 1024)
    vmem_limit = int(min(cap, budget + cap // 4))

    # Working-set model: single-buffered weights + f32 bias, double-buffered
    # x/out blocks, f32 intermediates & transposed copies (4 B regardless of dtype).
    fixed = itemsize * (out0 * in0 + in1 * out1) + 4 * out0 * out1
    per_b = (2 * in0 * in1 * itemsize
             + 2 * out0 * out1 * itemsize
             + 4 * (in0 * in1 + out0 * in1 + in0 * out1 + 2 * out0 * out1))

    m_dims = (in1, out0) if l_first else (in0, out1)
    bb = (_pick_block_batch(B, m_dims, fixed, per_b, budget)
          if block_batch is None else block_batch)
    assert B % bb == 0, "block_batch must divide the batch size"

    flops = B * (min(flops_l, flops_r) + 2 * out0 * out1)
    bytes_accessed = (itemsize * (x.size + weight_l.size + weight_r.size
                                  + B * out0 * out1) + 4 * bias_eff.size)

    def wspec(shape):
        if use_buffered:
            return pl.BlockSpec(shape, lambda b: (0, 0),
                                pipeline_mode=pl.Buffered(1))
        return pl.BlockSpec(shape, lambda b: (0, 0))

    kernel = _make_fused_kernel(bb, in0, in1, out0, out1, l_first)
    call = pl.pallas_call(
        kernel,
        out_shape=jax.ShapeDtypeStruct((B, out0, out1), x.dtype),
        grid=(B // bb,),
        in_specs=[
            pl.BlockSpec((bb, in0, in1), lambda b: (b, 0, 0)),
            wspec((out0, in0)),
            wspec((in1, out1)),
            wspec((out0, out1)),
        ],
        out_specs=pl.BlockSpec((bb, out0, out1), lambda b: (b, 0, 0)),
        compiler_params=pltpu.CompilerParams(
            dimension_semantics=("parallel",),
            vmem_limit_bytes=vmem_limit),
        cost_estimate=pl.CostEstimate(
            flops=int(flops), transcendentals=0,
            bytes_accessed=int(bytes_accessed)),
    )
    return jax.block_until_ready(call(x, weight_l, weight_r, bias_eff))


def _forward_simple(x, weight_l, weight_r, bias_eff):
    B, in0, in1 = x.shape
    out0, out1 = bias_eff.shape
    call = pl.pallas_call(
        _simple_kernel,
        out_shape=jax.ShapeDtypeStruct((B, out0, out1), x.dtype),
        grid=(B,),
        in_specs=[
            pl.BlockSpec((1, in0, in1), lambda b: (b, 0, 0)),
            pl.BlockSpec((out0, in0), lambda b: (0, 0)),
            pl.BlockSpec((in1, out1), lambda b: (0, 0)),
            pl.BlockSpec((out0, out1), lambda b: (0, 0)),
        ],
        out_specs=pl.BlockSpec((1, out0, out1), lambda b: (b, 0, 0)),
        compiler_params=pltpu.CompilerParams(
            dimension_semantics=("parallel",)),
    )
    return jax.block_until_ready(call(x, weight_l, weight_r, bias_eff))


def mm_layer_forward(x, weight_l, weight_r, bias_l, bias_r, *, block_batch=None):
    """out[b] = (W_l @ x[b] + B_l) @ W_r + B_r  (MMLayer.forward, jacobian=False)."""
    # Fold the left bias (computed once, outside the kernel, kept in f32):
    #   (W_l X + B_l) W_r + B_r == W_l X W_r + (B_l W_r + B_r)
    bias_eff = (jnp.dot(bias_l.astype(jnp.float32), weight_r.astype(jnp.float32),
                        preferred_element_type=jnp.float32)
                + bias_r.astype(jnp.float32))

    attempts = (
        lambda: _forward_fused(x, weight_l, weight_r, bias_eff, block_batch, True),
        lambda: _forward_fused(x, weight_l, weight_r, bias_eff, block_batch, False),
        lambda: _forward_simple(x, weight_l, weight_r, bias_eff),
    )
    err = None
    for run in attempts:
        try:
            return run()
        except Exception as e:          # fall back to a more conservative variant
            err = e
    raise err


# ----------------------------------------------------------------------------
# Parameter init (mirrors MMLayer.reset_parameters) and pure-JAX reference
# ----------------------------------------------------------------------------
def init_params(key, in_features, out_features, dtype=jnp.float32):
    in0, in1 = in_features
    out0, out1 = out_features
    k_wl, k_wr, k_bl, k_br = jax.random.split(key, 4)
    # kaiming_uniform_(a=sqrt(5)) => bound = 1/sqrt(fan_in)
    bound_wl = 1.0 / math.sqrt(in0)     # weight_l: (out0, in0) -> fan_in = in0
    bound_wr = 1.0 / math.sqrt(out1)    # weight_r: (in1, out1) -> fan_in = out1
    weight_l = jax.random.uniform(k_wl, (out0, in0), dtype, -bound_wl, bound_wl)
    weight_r = jax.random.uniform(k_wr, (in1, out1), dtype, -bound_wr, bound_wr)
    bias_l = jax.random.uniform(k_bl, (out0, in1), dtype, -bound_wl, bound_wl)
    bias_r = jax.random.uniform(k_br, (out0, out1), dtype, -bound_wr, bound_wr)
    return weight_l, weight_r, bias_l, bias_r


def mm_layer_reference(x, weight_l, weight_r, bias_l, bias_r):
    hi = jax.lax.Precision.HIGHEST
    z = jnp.einsum("pi,bij->bpj", weight_l, x, precision=hi) + bias_l[None]
    return jnp.einsum("bpj,jq->bpq", z, weight_r, precision=hi) + bias_r[None]


# ----------------------------------------------------------------------------
if __name__ == "__main__":
    key = jax.random.PRNGKey(0)

    configs = [
        # (B, in_features, out_features)
        (2, (16, 32), (8, 16)),    # exercises the (W_l X) W_r association
        (4, (8, 16), (32, 8)),     # exercises the W_l (X W_r) association, bb=2
    ]

    for idx, (B, in_features, out_features) in enumerate(configs):
        k_x, k_p = jax.random.split(jax.random.fold_in(key, idx))
        x = jax.random.normal(k_x, (B,) + in_features, dtype=jnp.float32)
        weight_l, weight_r, bias_l, bias_r = init_params(
            k_p, in_features, out_features)

        out = mm_layer_forward(x, weight_l, weight_r, bias_l, bias_r)
        out = jax.block_until_ready(out)

        ref = mm_layer_reference(x, weight_l, weight_r, bias_l, bias_r)
        assert out.shape == (B,) + out_features
        max_err = jnp.max(jnp.abs(out - ref))
        assert jnp.allclose(out, ref, atol=2e-3, rtol=2e-3), (
            f"mismatch for config {idx}: max abs err = {max_err}")

    print("KERNEL_OK")
</pallas_src>

<mosaic_0001>
module attributes {stable_mosaic.version = 11 : i64} {
  func.func @kernel(%arg0: i32, %arg1: memref<1x16x32xf32, #tpu.memory_space<vmem>>, %arg2: memref<8x16xf32, #tpu.memory_space<vmem>>, %arg3: memref<32x16xf32, #tpu.memory_space<vmem>>, %arg4: memref<8x16xf32, #tpu.memory_space<vmem>>, %arg5: memref<1x8x16xf32, #tpu.memory_space<vmem>>) attributes {dimension_semantics = [#tpu.dimension_semantics<parallel>], iteration_bounds = array<i64: 2>, scalar_prefetch = 0 : i64, scratch_operands = 0 : i64, tpu.core_type = #tpu.core_type<tc>, window_params = [{transform_indices = @transform_0, window_bounds = array<i64: 1, 16, 32>}, {pipeline_mode = #tpu.pipeline_mode<synchronous>, transform_indices = @transform_1, window_bounds = array<i64: 8, 16>}, {pipeline_mode = #tpu.pipeline_mode<synchronous>, transform_indices = @transform_2, window_bounds = array<i64: 32, 16>}, {pipeline_mode = #tpu.pipeline_mode<synchronous>, transform_indices = @transform_3, window_bounds = array<i64: 8, 16>}, {transform_indices = @transform_4, window_bounds = array<i64: 1, 8, 16>}]} {
    %c0 = arith.constant 0 : index
    %c0_0 = arith.constant 0 : index
    %c0_1 = arith.constant 0 : index
    %0 = vector.load %arg1[%c0, %c0_0, %c0_1] : memref<1x16x32xf32, #tpu.memory_space<vmem>>, vector<1x16x32xf32>
    %c0_2 = arith.constant 0 : index
    %c0_3 = arith.constant 0 : index
    %1 = vector.load %arg2[%c0_2, %c0_3] : memref<8x16xf32, #tpu.memory_space<vmem>>, vector<8x16xf32>
    %c0_4 = arith.constant 0 : index
    %c0_5 = arith.constant 0 : index
    %2 = vector.load %arg3[%c0_4, %c0_5] : memref<32x16xf32, #tpu.memory_space<vmem>>, vector<32x16xf32>
    %3 = tpu.transpose %0, [0, 2, 1] : vector<1x16x32xf32> -> vector<1x32x16xf32>
    %4 = vector.shape_cast %3 : vector<1x32x16xf32> to vector<32x16xf32>
    %cst = arith.constant dense<0.000000e+00> : vector<32x8xf32>
    %5 = tpu.matmul %4, %1, %cst {dimension_numbers = #tpu.dot_dimension_numbers<[1], [1], [0], [0], [0, 0, 1, 0], [], []>} : vector<32x16xf32>, vector<8x16xf32>, vector<32x8xf32> -> vector<32x8xf32>
    %6 = vector.shape_cast %5 : vector<32x8xf32> to vector<1x32x8xf32>
    %7 = tpu.transpose %6, [0, 2, 1] : vector<1x32x8xf32> -> vector<1x8x32xf32>
    %8 = vector.shape_cast %7 : vector<1x8x32xf32> to vector<8x32xf32>
    %cst_6 = arith.constant dense<0.000000e+00> : vector<8x16xf32>
    %9 = tpu.matmul %8, %2, %cst_6 {dimension_numbers = #tpu.dot_dimension_numbers<[1], [0], [0], [1], [0, 0, 1, 1], [], []>} : vector<8x32xf32>, vector<32x16xf32>, vector<8x16xf32> -> vector<8x16xf32>
    %10 = vector.shape_cast %9 : vector<8x16xf32> to vector<1x8x16xf32>
    %c0_7 = arith.constant 0 : index
    %c0_8 = arith.constant 0 : index
    %11 = vector.load %arg4[%c0_7, %c0_8] : memref<8x16xf32, #tpu.memory_space<vmem>>, vector<8x16xf32>
    %12 = vector.shape_cast %11 : vector<8x16xf32> to vector<1x8x16xf32>
    %13 = arith.addf %10, %12 : vector<1x8x16xf32>
    %c0_9 = arith.constant 0 : index
    %c0_10 = arith.constant 0 : index
    %c0_11 = arith.constant 0 : index
    %14 = vector.load %arg5[%c0_9, %c0_10, %c0_11] : memref<1x8x16xf32, #tpu.memory_space<vmem>>, vector<1x8x16xf32>
    tpu.vector_store %arg5[%c0_9, %c0_10, %c0_11], %13 {strides = array<i32>} : memref<1x8x16xf32, #tpu.memory_space<vmem>>, vector<1x8x16xf32>,
    return
  }
  func.func @transform_0(%arg0: i32) -> (i32, i32, i32) {
    %c0_i32 = arith.constant 0 : i32
    %c0_i32_0 = arith.constant 0 : i32
    %c0_i32_1 = arith.constant 0 : i32
    return %arg0, %c0_i32, %c0_i32_0 : i32, i32, i32
  }
  func.func @transform_1(%arg0: i32) -> (i32, i32) {
    %c0_i32 = arith.constant 0 : i32
    %c0_i32_0 = arith.constant 0 : i32
    %c0_i32_1 = arith.constant 0 : i32
    return %c0_i32, %c0_i32_0 : i32, i32
  }
  func.func @transform_2(%arg0: i32) -> (i32, i32) {
    %c0_i32 = arith.constant 0 : i32
    %c0_i32_0 = arith.constant 0 : i32
    %c0_i32_1 = arith.constant 0 : i32
    return %c0_i32, %c0_i32_0 : i32, i32
  }
  func.func @transform_3(%arg0: i32) -> (i32, i32) {
    %c0_i32 = arith.constant 0 : i32
    %c0_i32_0 = arith.constant 0 : i32
    %c0_i32_1 = arith.constant 0 : i32
    return %c0_i32, %c0_i32_0 : i32, i32
  }
  func.func @transform_4(%arg0: i32) -> (i32, i32, i32) {
    %c0_i32 = arith.constant 0 : i32
    %c0_i32_0 = arith.constant 0 : i32
    %c0_i32_1 = arith.constant 0 : i32
    return %arg0, %c0_i32, %c0_i32_0 : i32, i32, i32
  }
}

module attributes {stable_mosaic.version = 11 : i64} {
  func.func @kernel(%arg0: i32, %arg1: memref<1x16x32xf32, #tpu.memory_space<vmem>>, %arg2: memref<8x16xf32, #tpu.memory_space<vmem>>, %arg3: memref<32x16xf32, #tpu.memory_space<vmem>>, %arg4: memref<8x16xf32, #tpu.memory_space<vmem>>, %arg5: memref<1x8x16xf32, #tpu.memory_space<vmem>>) attributes {dimension_semantics = [#tpu.dimension_semantics<parallel>], iteration_bounds = array<i64: 2>, scalar_prefetch = 0 : i64, scratch_operands = 0 : i64, tpu.core_type = #tpu.core_type<tc>, window_params = [{transform_indices = @transform_0, window_bounds = array<i64: 1, 16, 32>}, {pipeline_mode = #tpu.pipeline_mode<synchronous>, transform_indices = @transform_1, window_bounds = array<i64: 8, 16>}, {pipeline_mode = #tpu.pipeline_mode<synchronous>, transform_indices = @transform_2, window_bounds = array<i64: 32, 16>}, {pipeline_mode = #tpu.pipeline_mode<synchronous>, transform_indices = @transform_3, window_bounds = array<i64: 8, 16>}, {transform_indices = @transform_4, window_bounds = array<i64: 1, 8, 16>}]} {
    %c0 = arith.constant 0 : index
    %c0_0 = arith.constant 0 : index
    %c0_1 = arith.constant 0 : index
    %0 = vector.load %arg1[%c0, %c0_0, %c0_1] : memref<1x16x32xf32, #tpu.memory_space<vmem>>, vector<1x16x32xf32>
    %c0_2 = arith.constant 0 : index
    %c0_3 = arith.constant 0 : index
    %1 = vector.load %arg2[%c0_2, %c0_3] : memref<8x16xf32, #tpu.memory_space<vmem>>, vector<8x16xf32>
    %c0_4 = arith.constant 0 : index
    %c0_5 = arith.constant 0 : index
    %2 = vector.load %arg3[%c0_4, %c0_5] : memref<32x16xf32, #tpu.memory_space<vmem>>, vector<32x16xf32>
    %3 = tpu.transpose %0, [0, 2, 1] : vector<1x16x32xf32> -> vector<1x32x16xf32>
    %4 = vector.shape_cast %3 : vector<1x32x16xf32> to vector<32x16xf32>
    %cst = arith.constant dense<0.000000e+00> : vector<32x8xf32>
    %5 = tpu.matmul %4, %1, %cst {dimension_numbers = #tpu.dot_dimension_numbers<[1], [1], [0], [0], [0, 0, 1, 0], [], []>} : vector<32x16xf32>, vector<8x16xf32>, vector<32x8xf32> -> vector<32x8xf32>
    %6 = vector.shape_cast %5 : vector<32x8xf32> to vector<1x32x8xf32>
    %7 = tpu.transpose %6, [0, 2, 1] : vector<1x32x8xf32> -> vector<1x8x32xf32>
    %8 = vector.shape_cast %7 : vector<1x8x32xf32> to vector<8x32xf32>
    %cst_6 = arith.constant dense<0.000000e+00> : vector<8x16xf32>
    %9 = tpu.matmul %8, %2, %cst_6 {dimension_numbers = #tpu.dot_dimension_numbers<[1], [0], [0], [1], [0, 0, 1, 1], [], []>} : vector<8x32xf32>, vector<32x16xf32>, vector<8x16xf32> -> vector<8x16xf32>
    %10 = vector.shape_cast %9 : vector<8x16xf32> to vector<1x8x16xf32>
    %c0_7 = arith.constant 0 : index
    %c0_8 = arith.constant 0 : index
    %11 = vector.load %arg4[%c0_7, %c0_8] : memref<8x16xf32, #tpu.memory_space<vmem>>, vector<8x16xf32>
    %12 = vector.shape_cast %11 : vector<8x16xf32> to vector<1x8x16xf32>
    %13 = arith.addf %10, %12 : vector<1x8x16xf32>
    %c0_9 = arith.constant 0 : index
    %c0_10 = arith.constant 0 : index
    %c0_11 = arith.constant 0 : index
    %14 = vector.load %arg5[%c0_9, %c0_10, %c0_11] : memref<1x8x16xf32, #tpu.memory_space<vmem>>, vector<1x8x16xf32>
    tpu.vector_store %arg5[%c0_9, %c0_10, %c0_11], %13 {strides = array<i32>} : memref<1x8x16xf32, #tpu.memory_space<vmem>>, vector<1x8x16xf32>,
    return
  }
  func.func @transform_0(%arg0: i32) -> (i32, i32, i32) {
    %c0_i32 = arith.constant 0 : i32
    %c0_i32_0 = arith.constant 0 : i32
    %c0_i32_1 = arith.constant 0 : i32
    return %arg0, %c0_i32, %c0_i32_0 : i32, i32, i32
  }
  func.func @transform_1(%arg0: i32) -> (i32, i32) {
    %c0_i32 = arith.constant 0 : i32
    %c0_i32_0 = arith.constant 0 : i32
    %c0_i32_1 = arith.constant 0 : i32
    return %c0_i32, %c0_i32_0 : i32, i32
  }
  func.func @transform_2(%arg0: i32) -> (i32, i32) {
    %c0_i32 = arith.constant 0 : i32
    %c0_i32_0 = arith.constant 0 : i32
    %c0_i32_1 = arith.constant 0 : i32
    return %c0_i32, %c0_i32_0 : i32, i32
  }
  func.func @transform_3(%arg0: i32) -> (i32, i32) {
    %c0_i32 = arith.constant 0 : i32
    %c0_i32_0 = arith.constant 0 : i32
    %c0_i32_1 = arith.constant 0 : i32
    return %c0_i32, %c0_i32_0 : i32, i32
  }
  func.func @transform_4(%arg0: i32) -> (i32, i32, i32) {
    %c0_i32 = arith.constant 0 : i32
    %c0_i32_0 = arith.constant 0 : i32
    %c0_i32_1 = arith.constant 0 : i32
    return %arg0, %c0_i32, %c0_i32_0 : i32, i32, i32
  }
}

module attributes {stable_mosaic.version = 11 : i64} {
  func.func @_simple_kernel(%arg0: i32, %arg1: memref<1x16x32xf32, #tpu.memory_space<vmem>>, %arg2: memref<8x16xf32, #tpu.memory_space<vmem>>, %arg3: memref<32x16xf32, #tpu.memory_space<vmem>>, %arg4: memref<8x16xf32, #tpu.memory_space<vmem>>, %arg5: memref<1x8x16xf32, #tpu.memory_space<vmem>>) attributes {dimension_semantics = [#tpu.dimension_semantics<parallel>], iteration_bounds = array<i64: 2>, scalar_prefetch = 0 : i64, scratch_operands = 0 : i64, tpu.core_type = #tpu.core_type<tc>, window_params = [{transform_indices = @transform_0, window_bounds = array<i64: 1, 16, 32>}, {pipeline_mode = #tpu.pipeline_mode<synchronous>, transform_indices = @transform_1, window_bounds = array<i64: 8, 16>}, {pipeline_mode = #tpu.pipeline_mode<synchronous>, transform_indices = @transform_2, window_bounds = array<i64: 32, 16>}, {pipeline_mode = #tpu.pipeline_mode<synchronous>, transform_indices = @transform_3, window_bounds = array<i64: 8, 16>}, {transform_indices = @transform_4, window_bounds = array<i64: 1, 8, 16>}]} {
    %c0 = arith.constant 0 : index
    %c0_0 = arith.constant 0 : index
    %0 = vector.load %arg2[%c0, %c0_0] : memref<8x16xf32, #tpu.memory_space<vmem>>, vector<8x16xf32>
    %c0_1 = arith.constant 0 : index
    %c0_2 = arith.constant 0 : index
    %c0_3 = arith.constant 0 : index
    %1 = vector.load %arg1[%c0_1, %c0_2, %c0_3] : memref<1x16x32xf32, #tpu.memory_space<vmem>>, vector<1x16x32xf32>
    %2 = vector.shape_cast %1 : vector<1x16x32xf32> to vector<16x32xf32>
    %cst = arith.constant dense<0.000000e+00> : vector<8x32xf32>
    %3 = tpu.matmul %0, %2, %cst {dimension_numbers = #tpu.dot_dimension_numbers<[1], [0], [0], [1], [0, 0, 1, 1], [], []>} : vector<8x16xf32>, vector<16x32xf32>, vector<8x32xf32> -> vector<8x32xf32>
    %c0_4 = arith.constant 0 : index
    %c0_5 = arith.constant 0 : index
    %4 = vector.load %arg3[%c0_4, %c0_5] : memref<32x16xf32, #tpu.memory_space<vmem>>, vector<32x16xf32>
    %cst_6 = arith.constant dense<0.000000e+00> : vector<8x16xf32>
    %5 = tpu.matmul %3, %4, %cst_6 {dimension_numbers = #tpu.dot_dimension_numbers<[1], [0], [0], [1], [0, 0, 1, 1], [], []>} : vector<8x32xf32>, vector<32x16xf32>, vector<8x16xf32> -> vector<8x16xf32>
    %c0_7 = arith.constant 0 : index
    %c0_8 = arith.constant 0 : index
    %6 = vector.load %arg4[%c0_7, %c0_8] : memref<8x16xf32, #tpu.memory_space<vmem>>, vector<8x16xf32>
    %7 = arith.addf %5, %6 : vector<8x16xf32>
    %c0_9 = arith.constant 0 : index
    %c0_10 = arith.constant 0 : index
    %c0_11 = arith.constant 0 : index
    %8 = vector.load %arg5[%c0_9, %c0_10, %c0_11] : memref<1x8x16xf32, #tpu.memory_space<vmem>>, vector<1x8x16xf32>
    %9 = vector.shape_cast %8 : vector<1x8x16xf32> to vector<8x16xf32>
    %10 = vector.shape_cast %7 : vector<8x16xf32> to vector<1x8x16xf32>
    tpu.vector_store %arg5[%c0_9, %c0_10, %c0_11], %10 {strides = array<i32>} : memref<1x8x16xf32, #tpu.memory_space<vmem>>, vector<1x8x16xf32>,
    return
  }
  func.func @transform_0(%arg0: i32) -> (i32, i32, i32) {
    %c0_i32 = arith.constant 0 : i32
    %c0_i32_0 = arith.constant 0 : i32
    %c0_i32_1 = arith.constant 0 : i32
    return %arg0, %c0_i32, %c0_i32_0 : i32, i32, i32
  }
  func.func @transform_1(%arg0: i32) -> (i32, i32) {
    %c0_i32 = arith.constant 0 : i32
    %c0_i32_0 = arith.constant 0 : i32
    %c0_i32_1 = arith.constant 0 : i32
    return %c0_i32, %c0_i32_0 : i32, i32
  }
  func.func @transform_2(%arg0: i32) -> (i32, i32) {
    %c0_i32 = arith.constant 0 : i32
    %c0_i32_0 = arith.constant 0 : i32
    %c0_i32_1 = arith.constant 0 : i32
    return %c0_i32, %c0_i32_0 : i32, i32
  }
  func.func @transform_3(%arg0: i32) -> (i32, i32) {
    %c0_i32 = arith.constant 0 : i32
    %c0_i32_0 = arith.constant 0 : i32
    %c0_i32_1 = arith.constant 0 : i32
    return %c0_i32, %c0_i32_0 : i32, i32
  }
  func.func @transform_4(%arg0: i32) -> (i32, i32, i32) {
    %c0_i32 = arith.constant 0 : i32
    %c0_i32_0 = arith.constant 0 : i32
    %c0_i32_1 = arith.constant 0 : i32
    return %arg0, %c0_i32, %c0_i32_0 : i32, i32, i32
  }
}

</mosaic_0001>

<bundles_post_ra>
// kernel: tpu_custom_call.1
= control target key start
LH: loop header
LB: loop body
LE: loop exit
PB: predicated region body
PF: predicated region fallthrough
CT: control target
= control target key end

     0   :  { %9 = vsyncpa [#allocation3], 0  ;;  %s674_s0 = inlined_call_operand.vmem [shape: f32[2,16,32], index: 0, kind: input, shape index: {}]   ;;  %s675_s1 = inlined_call_operand.vmem [shape: f32[8,16], index: 1, kind: input, shape index: {}]   ;;  %s676_s2 = inlined_call_operand.vmem [shape: f32[32,16], index: 2, kind: input, shape index: {}]   ;;  %s677_s3 = inlined_call_operand.vmem [shape: f32[8,16], index: 3, kind: input, shape index: {}]   ;;  %s678_s4 = inlined_call_operand.hbm [shape: f32[2,8,16], index: 4, kind: output, shape index: {}]  }
   0x1   :  { %11 = vsyncpa [#allocation3 + $0x1], 0  ;;  %s563_s15 = smov 0   ;;  %s565_s16 = smov 0  }
   0x2   :  { %s567_s17 = smov 0   ;;  %s569_s18 = smov 0  }
   0x3 LB: > { %s584_s19 = sadd.s32 4294967295, %s536_s18   ;;  %s414_s20 = sadd.s32 4294967294, %s536_s18   ;;  %s536_s18 = sphi %s569_s18, %s684_s18   ;;  %s532_s17 = sphi %s567_s17, %s683_s17   ;;  %s528_s16 = sphi %s565_s16, %s682_s16   ;;  %s524_s15 = sphi %s563_s15, %s681_s15  }
   0x4   : > { %s588_s21 = sadd.s32 1, %s536_s18   ;;  %s113_s22 = sadd.s32 1, %s532_s17 }
   0x5   : > { %s110_s23 = ssub.s32 %s536_s18, %s588_s21  ;;  %p123_p0 = scmp.ne.s32.totalorder %s532_s17, %s528_s16 }
   0x6   : > { %p111_p1 = scmp.eq.s32.totalorder %s110_s23, 0  ;;  %p124_p2 = scmp.eq.s32.totalorder %s584_s19, 1 }
   0x7   : > { %p129_p3 = scmp.ne.s32.totalorder %s528_s16, %s524_s15  ;;  %p130_p4 = scmp.eq.s32.totalorder %s414_s20, 1 }
   0x8   : > { %s599_s24 = scalar_select %p111_p1, %s532_s17, %s113_s22  }
   0x9   : > { %p601_p5 = por %p124_p2, %p123_p0  ;;  %p605_p6 = por %p130_p4, %p129_p3 }
   0xa   : > { %p417_p7 = scmp.ge.s32.totalorder %s536_s18, 1  ;;  %p165_p8 = scmp.lt.s32.totalorder %s536_s18, 3 }
   0xc   : > { %p166_p9 = pnand %p417_p7, %p165_p8 }
   0xd   : > { %p191_p10 = scmp.lt.s32.totalorder (!%p166_p9), %s584_s19, 1  ;;  %s188_s22 = sand.u32 (!%p166_p9), 1, %s528_s16  }
   0xe   : > { %169 = sbr.rel (%p166_p9) target bundleno = 617 (0x269), region = 36  ;;  %s418_s23 = sshll.u32 (!%p166_p9), %s188_s22, 3 }
   0xf   : > { %s428_s27 = sshll.u32 (!%p166_p9), %s584_s19, 3  ;;  %s340_s10 = scalar_lea.sflag (!%p166_p9), [#allocation3], %s188_s22 }
  0x10   : > { %s494_s14 = scalar_lea.hbm (!%p166_p9), %s678_s4, 16 }
  0x13   : > { %v198_v0 = vld [vmem:[%s675_s1] sm:$0xff]  ;;  %vm235_vm0 = vcmask 130048   ;;  %s192_s29 = scalar_select %p191_p10, %s584_s19, 1  ;;  %v202_v7 = vld [vmem:[%s676_s2 + $0x18] sm:$0xff]  ;;  %v201_v8 = vld [vmem:[%s676_s2 + $0x10] sm:$0xff]  ;;  %vm312_vm1 = vcmask 261120  }
  0x14   : > { %421 = vmatpush.xpose.msk.msra.mxu0 %vm235_vm0, %v198_v0  ;;  %432 = vmatpush.xpose.msk.msra.mxu2 %vm235_vm0, %v198_v0  ;;  %v200_v10 = vld [vmem:[%s676_s2 + $0x8] sm:$0xff]  ;;  %v199_v11 = vld [vmem:[%s676_s2] sm:$0xff] }
  0x15   : > { %433 = vmatpush.xpose.msk.msra.mxu3 %vm235_vm0, %v198_v0  ;;  %s431_s30 = sshll.u32 %s192_s29, 4  ;;  %328 = vmatpush.msra.mxu1 %v202_v7  ;;  %v336_v16 = vld [vmem:[%s677_s3] sm:$0xff] }
  0x16   : > { %s195_s7 = scalar_lea.vmem %s674_s0, %s431_s30  ;;  %s350_s30 = scalar_lea.hbm %s678_s4, %s428_s27 }
  0x17   : > { %v196_v1 = vld [vmem:[%s195_s7] sm:$0xff]  ;;  %v197_v2 = vld [vmem:[%s195_s7 + $0x8] sm:$0xff]  ;;  %329 = vmatpush.msra.mxu1 %v201_v8  ;;  %s190_s7 = scalar_lea.vmem [#allocation2], %s418_s23  ;;  %s354_s9 = sshll.u32 %s350_s30, 4  ;;  %s355_s9 = int_to_ptr.hbm [resolvable:$true] %s354_s9 }
  0x18   : > { %203 = vxpose.xlu0.b32.start [1/2] (short) (narrow) %v196_v1, 32  ;;  %s352_s8 = sshll.u32 %s190_s7, 4  ;;  %s488_s19 = sshra.s32 %s355_s9, 4  ;;  %s353_s8 = int_to_ptr.vmem [resolvable:$true] %s352_s8  ;;  %s489_s19 = int_to_ptr.hbm [resolvable:$true] %s488_s19 }
  0x19   : > { %330 = vmatpush.msra.mxu1 %v200_v10  ;;  %s490_s11 = scalar_lea.hbm %s489_s19, 8  ;;  %p495_p0 = scmp.lt.s32.totalorder %s489_s19, %s678_s4 }
  0x1a   : > { %p491_p11 = scmp.ne.s32.totalorder %s489_s19, %s490_s11  ;;  %p496_p1 = scmp.lt.s32.totalorder %s494_s14, %s490_s11 }
  0x1b   : > { %331 = vmatpush.msra.mxu1 %v199_v11 }
  0x1c   : > { %p492_p12 = pnand %p491_p11, %p601_p5  ;;  %p497_p2 = por %p496_p1, %p495_p0 }
  0x1e   : > { %p493_p13 = pneg %p492_p12 }
  0x20   : > { %204 = vxpose.xlu0.b32.end [2/2] (short) (narrow) %v197_v2, 32  ;;  %p498_p3 = pnand %p497_p2, %p493_p13 }
  0xbc   : > { %v219_v3 = vpop.trf.xlu0 }
  0xbd   : > { %422 = vmatmul.msk.f32.vlgmr.msra.gmra.mxu0 %vm235_vm0, %v219_v3 }
  0xc4   : > { %v220_v4 = vpop.trf.xlu0 }
  0xc5   : > { %423 = vmatmul.msk.f32.vlgmr.msra.gmra.mxu2 %vm235_vm0, %v220_v4 }
  0xcc   : > { %v221_v5 = vpop.trf.xlu0 }
  0xcd   : > { %424 = vmatmul.msk.f32.gmra.mxu2 %vm235_vm0, %v221_v5 }
  0xd4   : > { %v222_v6 = vpop.trf.xlu0 }
  0xd5   : > { %425 = vmatmul.msk.f32.vlgmr.msra.gmra.mxu3 %vm235_vm0, %v222_v6 }
 0x13a   : > { %v268_v9 = vpop.f32.mrf.mxu0 }
 0x13b   : > { %280 = vxpose.xlu1.b32.start [1/4] (short) (narrow) %v268_v9, 8 }
 0x148   : > { %v271_v12 = vpop.f32.mrf.mxu2 }
 0x149   : > { %281 = vxpose.xlu1.b32.cont [2/4] (short) (narrow) %v271_v12, 8 }
 0x150   : > { %v274_v13 = vpop.f32.mrf.mxu2 }
 0x151   : > { %282 = vxpose.xlu1.b32.cont [3/4] (short) (narrow) %v274_v13, 8 }
 0x158   : > { %v277_v14 = vpop.f32.mrf.mxu3 }
 0x159   : > { %283 = vxpose.xlu1.b32.end [4/4] (short) (narrow) %v277_v14, 8 }
 0x1e5   : > { %v296_v15 = vpop.trf.xlu1 }
 0x1e6   : > { %426 = vmatmul.msk.f32.vlgmr.msra.gmra.mxu1 %vm312_vm1, %v296_v15 }
 0x263   : > { %v333_v17 = vpop.f32.mrf.mxu1 }
 0x264   : > { %v337_v18 = vadd.f32 %v336_v16, %v333_v17 }
 0x266   : > { %338 = vst.msk [vmem:[%s190_s7] sm:$0xff] %vm235_vm0, %v337_v18 }
 0x267   : > { %501 = shalt.err (!%p498_p3)
}
 0x268   : > { %434 = dma.vmem_to_hbm [thread:$0]  (%p601_p5), %s353_s8, 128, %s355_s9, %s340_s10  }
 0x269 PF: > { %p440_p4 = scmp.ge.s32.totalorder %s536_s18, 2  ;;  %s366_s22 = sand.u32 1, %s524_s15  }
 0x26a   : > { %s367_s27 = scalar_lea.sflag [#allocation3], %s366_s22 }
 0x26b   : > { %p437_p7 = pnand %p440_p4, %p605_p6 }
 0x26d   : > { %p438_p8 = pneg %p437_p7 }
 0x26f   : > { %519 = dma.done.wait (%p438_p8), %s367_s27, 128  }
 0x270   : > { %521 = vsyncadd (%p438_p8), %s367_s27, 4294967168  ;;  %p14_p9 = scmp.ge.s32.totalorder %s588_s21, 4   ;;  %s681_s15 = smov %s528_s16 }
 0x271   : > { %s682_s16 = smov %s532_s17  ;;  %s683_s17 = smov %s599_s24 }
 0x272   : > { %s684_s18 = smov %s588_s21  ;;  %16 = sbr.rel (!%p14_p9) target bundleno = 3 (0x3), region = 71 }
 0x277   :  { %373 = vsyncpa [#allocation3], 1 }
 0x278   :  { %375 = vsyncpa [#allocation3 + $0x1], 1 }

// kernel: tpu_custom_call.1
= control target key start
LH: loop header
LB: loop body
LE: loop exit
PB: predicated region body
PF: predicated region fallthrough
CT: control target
= control target key end

     0   :  { %9 = vsyncpa [#allocation3], 0  ;;  %s674_s0 = inlined_call_operand.vmem [shape: f32[2,16,32], index: 0, kind: input, shape index: {}]   ;;  %s675_s1 = inlined_call_operand.vmem [shape: f32[8,16], index: 1, kind: input, shape index: {}]   ;;  %s676_s2 = inlined_call_operand.vmem [shape: f32[32,16], index: 2, kind: input, shape index: {}]   ;;  %s677_s3 = inlined_call_operand.vmem [shape: f32[8,16], index: 3, kind: input, shape index: {}]   ;;  %s678_s4 = inlined_call_operand.hbm [shape: f32[2,8,16], index: 4, kind: output, shape index: {}]  }
   0x1   :  { %11 = vsyncpa [#allocation3 + $0x1], 0  ;;  %s563_s15 = smov 0   ;;  %s565_s16 = smov 0  }
   0x2   :  { %s567_s17 = smov 0   ;;  %s569_s18 = smov 0  }
   0x3 LB: > { %s584_s19 = sadd.s32 4294967295, %s536_s18   ;;  %s414_s20 = sadd.s32 4294967294, %s536_s18   ;;  %s536_s18 = sphi %s569_s18, %s684_s18   ;;  %s532_s17 = sphi %s567_s17, %s683_s17   ;;  %s528_s16 = sphi %s565_s16, %s682_s16   ;;  %s524_s15 = sphi %s563_s15, %s681_s15  }
   0x4   : > { %s588_s21 = sadd.s32 1, %s536_s18   ;;  %s113_s22 = sadd.s32 1, %s532_s17 }
   0x5   : > { %s110_s23 = ssub.s32 %s536_s18, %s588_s21  ;;  %p123_p0 = scmp.ne.s32.totalorder %s532_s17, %s528_s16 }
   0x6   : > { %p111_p1 = scmp.eq.s32.totalorder %s110_s23, 0  ;;  %p124_p2 = scmp.eq.s32.totalorder %s584_s19, 1 }
   0x7   : > { %p129_p3 = scmp.ne.s32.totalorder %s528_s16, %s524_s15  ;;  %p130_p4 = scmp.eq.s32.totalorder %s414_s20, 1 }
   0x8   : > { %s599_s24 = scalar_select %p111_p1, %s532_s17, %s113_s22  }
   0x9   : > { %p601_p5 = por %p124_p2, %p123_p0  ;;  %p605_p6 = por %p130_p4, %p129_p3 }
   0xa   : > { %p417_p7 = scmp.ge.s32.totalorder %s536_s18, 1  ;;  %p165_p8 = scmp.lt.s32.totalorder %s536_s18, 3 }
   0xc   : > { %p166_p9 = pnand %p417_p7, %p165_p8 }
   0xd   : > { %p191_p10 = scmp.lt.s32.totalorder (!%p166_p9), %s584_s19, 1  ;;  %s188_s22 = sand.u32 (!%p166_p9), 1, %s528_s16  }
   0xe   : > { %169 = sbr.rel (%p166_p9) target bundleno = 617 (0x269), region = 36  ;;  %s418_s23 = sshll.u32 (!%p166_p9), %s188_s22, 3 }
   0xf   : > { %s428_s27 = sshll.u32 (!%p166_p9), %s584_s19, 3  ;;  %s340_s10 = scalar_lea.sflag (!%p166_p9), [#allocation3], %s188_s22 }
  0x10   : > { %s494_s14 = scalar_lea.hbm (!%p166_p9), %s678_s4, 16 }
  0x13   : > { %v198_v0 = vld [vmem:[%s675_s1] sm:$0xff]  ;;  %vm235_vm0 = vcmask 130048   ;;  %s192_s29 = scalar_select %p191_p10, %s584_s19, 1  ;;  %v202_v7 = vld [vmem:[%s676_s2 + $0x18] sm:$0xff]  ;;  %v201_v8 = vld [vmem:[%s676_s2 + $0x10] sm:$0xff]  ;;  %vm312_vm1 = vcmask 261120  }
  0x14   : > { %421 = vmatpush.xpose.msk.msra.mxu0 %vm235_vm0, %v198_v0  ;;  %432 = vmatpush.xpose.msk.msra.mxu2 %vm235_vm0, %v198_v0  ;;  %v200_v10 = vld [vmem:[%s676_s2 + $0x8] sm:$0xff]  ;;  %v199_v11 = vld [vmem:[%s676_s2] sm:$0xff] }
  0x15   : > { %433 = vmatpush.xpose.msk.msra.mxu3 %vm235_vm0, %v198_v0  ;;  %s431_s30 = sshll.u32 %s192_s29, 4  ;;  %328 = vmatpush.msra.mxu1 %v202_v7  ;;  %v336_v16 = vld [vmem:[%s677_s3] sm:$0xff] }
  0x16   : > { %s195_s7 = scalar_lea.vmem %s674_s0, %s431_s30  ;;  %s350_s30 = scalar_lea.hbm %s678_s4, %s428_s27 }
  0x17   : > { %v196_v1 = vld [vmem:[%s195_s7] sm:$0xff]  ;;  %v197_v2 = vld [vmem:[%s195_s7 + $0x8] sm:$0xff]  ;;  %329 = vmatpush.msra.mxu1 %v201_v8  ;;  %s190_s7 = scalar_lea.vmem [#allocation2], %s418_s23  ;;  %s354_s9 = sshll.u32 %s350_s30, 4  ;;  %s355_s9 = int_to_ptr.hbm [resolvable:$true] %s354_s9 }
  0x18   : > { %203 = vxpose.xlu0.b32.start [1/2] (short) (narrow) %v196_v1, 32  ;;  %s352_s8 = sshll.u32 %s190_s7, 4  ;;  %s488_s19 = sshra.s32 %s355_s9, 4  ;;  %s353_s8 = int_to_ptr.vmem [resolvable:$true] %s352_s8  ;;  %s489_s19 = int_to_ptr.hbm [resolvable:$true] %s488_s19 }
  0x19   : > { %330 = vmatpush.msra.mxu1 %v200_v10  ;;  %s490_s11 = scalar_lea.hbm %s489_s19, 8  ;;  %p495_p0 = scmp.lt.s32.totalorder %s489_s19, %s678_s4 }
  0x1a   : > { %p491_p11 = scmp.ne.s32.totalorder %s489_s19, %s490_s11  ;;  %p496_p1 = scmp.lt.s32.totalorder %s494_s14, %s490_s11 }
  0x1b   : > { %331 = vmatpush.msra.mxu1 %v199_v11 }
  0x1c   : > { %p492_p12 = pnand %p491_p11, %p601_p5  ;;  %p497_p2 = por %p496_p1, %p495_p0 }
  0x1e   : > { %p493_p13 = pneg %p492_p12 }
  0x20   : > { %204 = vxpose.xlu0.b32.end [2/2] (short) (narrow) %v197_v2, 32  ;;  %p498_p3 = pnand %p497_p2, %p493_p13 }
  0xbc   : > { %v219_v3 = vpop.trf.xlu0 }
  0xbd   : > { %422 = vmatmul.msk.f32.vlgmr.msra.gmra.mxu0 %vm235_vm0, %v219_v3 }
  0xc4   : > { %v220_v4 = vpop.trf.xlu0 }
  0xc5   : > { %423 = vmatmul.msk.f32.vlgmr.msra.gmra.mxu2 %vm235_vm0, %v220_v4 }
  0xcc   : > { %v221_v5 = vpop.trf.xlu0 }
  0xcd   : > { %424 = vmatmul.msk.f32.gmra.mxu2 %vm235_vm0, %v221_v5 }
  0xd4   : > { %v222_v6 = vpop.trf.xlu0 }
  0xd5   : > { %425 = vmatmul.msk.f32.vlgmr.msra.gmra.mxu3 %vm235_vm0, %v222_v6 }
 0x13a   : > { %v268_v9 = vpop.f32.mrf.mxu0 }
 0x13b   : > { %280 = vxpose.xlu1.b32.start [1/4] (short) (narrow) %v268_v9, 8 }
 0x148   : > { %v271_v12 = vpop.f32.mrf.mxu2 }
 0x149   : > { %281 = vxpose.xlu1.b32.cont [2/4] (short) (narrow) %v271_v12, 8 }
 0x150   : > { %v274_v13 = vpop.f32.mrf.mxu2 }
 0x151   : > { %282 = vxpose.xlu1.b32.cont [3/4] (short) (narrow) %v274_v13, 8 }
 0x158   : > { %v277_v14 = vpop.f32.mrf.mxu3 }
 0x159   : > { %283 = vxpose.xlu1.b32.end [4/4] (short) (narrow) %v277_v14, 8 }
 0x1e5   : > { %v296_v15 = vpop.trf.xlu1 }
 0x1e6   : > { %426 = vmatmul.msk.f32.vlgmr.msra.gmra.mxu1 %vm312_vm1, %v296_v15 }
 0x263   : > { %v333_v17 = vpop.f32.mrf.mxu1 }
 0x264   : > { %v337_v18 = vadd.f32 %v336_v16, %v333_v17 }
 0x266   : > { %338 = vst.msk [vmem:[%s190_s7] sm:$0xff] %vm235_vm0, %v337_v18 }
 0x267   : > { %501 = shalt.err (!%p498_p3)
}
 0x268   : > { %434 = dma.vmem_to_hbm [thread:$0]  (%p601_p5), %s353_s8, 128, %s355_s9, %s340_s10  }
 0x269 PF: > { %p440_p4 = scmp.ge.s32.totalorder %s536_s18, 2  ;;  %s366_s22 = sand.u32 1, %s524_s15  }
 0x26a   : > { %s367_s27 = scalar_lea.sflag [#allocation3], %s366_s22 }
 0x26b   : > { %p437_p7 = pnand %p440_p4, %p605_p6 }
 0x26d   : > { %p438_p8 = pneg %p437_p7 }
 0x26f   : > { %519 = dma.done.wait (%p438_p8), %s367_s27, 128  }
 0x270   : > { %521 = vsyncadd (%p438_p8), %s367_s27, 4294967168  ;;  %p14_p9 = scmp.ge.s32.totalorder %s588_s21, 4   ;;  %s681_s15 = smov %s528_s16 }
 0x271   : > { %s682_s16 = smov %s532_s17  ;;  %s683_s17 = smov %s599_s24 }
 0x272   : > { %s684_s18 = smov %s588_s21  ;;  %16 = sbr.rel (!%p14_p9) target bundleno = 3 (0x3), region = 71 }
 0x277   :  { %373 = vsyncpa [#allocation3], 1 }
 0x278   :  { %375 = vsyncpa [#allocation3 + $0x1], 1 }

// kernel: tpu_custom_call.1
= control target key start
LH: loop header
LB: loop body
LE: loop exit
PB: predicated region body
PF: predicated region fallthrough
CT: control target
= control target key end

     0   :  { %9 = vsyncpa [#allocation3], 0  ;;  %s575_s0 = inlined_call_operand.vmem [shape: f32[2,16,32], index: 0, kind: input, shape index: {}]   ;;  %s576_s1 = inlined_call_operand.vmem [shape: f32[8,16], index: 1, kind: input, shape index: {}]   ;;  %s577_s2 = inlined_call_operand.vmem [shape: f32[32,16], index: 2, kind: input, shape index: {}]   ;;  %s578_s3 = inlined_call_operand.vmem [shape: f32[8,16], index: 3, kind: input, shape index: {}]   ;;  %s579_s4 = inlined_call_operand.hbm [shape: f32[2,8,16], index: 4, kind: output, shape index: {}]  }
   0x1   :  { %11 = vsyncpa [#allocation3 + $0x1], 0  ;;  %s470_s15 = smov 0   ;;  %s472_s16 = smov 0  }
   0x2   :  { %s474_s17 = smov 0   ;;  %s476_s18 = smov 0  }
   0x3 LB: > { %s491_s19 = sadd.s32 4294967295, %s443_s18   ;;  %s328_s20 = sadd.s32 4294967294, %s443_s18   ;;  %s443_s18 = sphi %s476_s18, %s585_s18   ;;  %s439_s17 = sphi %s474_s17, %s584_s17   ;;  %s435_s16 = sphi %s472_s16, %s583_s16   ;;  %s431_s15 = sphi %s470_s15, %s582_s15  }
   0x4   : > { %s495_s21 = sadd.s32 1, %s443_s18   ;;  %s113_s22 = sadd.s32 1, %s439_s17 }
   0x5   : > { %s110_s23 = ssub.s32 %s443_s18, %s495_s21  ;;  %p123_p0 = scmp.ne.s32.totalorder %s439_s17, %s435_s16 }
   0x6   : > { %p111_p1 = scmp.eq.s32.totalorder %s110_s23, 0  ;;  %p124_p2 = scmp.eq.s32.totalorder %s491_s19, 1 }
   0x7   : > { %p129_p3 = scmp.ne.s32.totalorder %s435_s16, %s431_s15  ;;  %p130_p4 = scmp.eq.s32.totalorder %s328_s20, 1 }
   0x8   : > { %s506_s24 = scalar_select %p111_p1, %s439_s17, %s113_s22  }
   0x9   : > { %p508_p5 = por %p124_p2, %p123_p0  ;;  %p512_p6 = por %p130_p4, %p129_p3 }
   0xa   : > { %p331_p7 = scmp.ge.s32.totalorder %s443_s18, 1  ;;  %p165_p8 = scmp.lt.s32.totalorder %s443_s18, 3 }
   0xc   : > { %p166_p9 = pnand %p331_p7, %p165_p8 }
   0xd   : > { %p191_p10 = scmp.lt.s32.totalorder (!%p166_p9), %s491_s19, 1  ;;  %s188_s22 = sand.u32 (!%p166_p9), 1, %s435_s16  }
   0xe   : > { %169 = sbr.rel (%p166_p9) target bundleno = 284 (0x11c), region = 36  ;;  %s332_s23 = sshll.u32 (!%p166_p9), %s188_s22, 3 }
   0xf   : > { %s338_s27 = sshll.u32 (!%p166_p9), %s491_s19, 3  ;;  %s190_s7 = scalar_lea.vmem (!%p166_p9), [#allocation2], %s332_s23 }
  0x10   : > { %s264_s30 = scalar_lea.hbm (!%p166_p9), %s579_s4, %s338_s27  ;;  %s254_s10 = scalar_lea.sflag (!%p166_p9), [#allocation3], %s188_s22 }
  0x11   : > { %s268_s9 = sshll.u32 (!%p166_p9), %s264_s30, 4  ;;  %s401_s14 = scalar_lea.hbm (!%p166_p9), %s579_s4, 16  ;;  %s269_s9 = int_to_ptr.hbm [resolvable:$true] %s268_s9 }
  0x13   : > { %v226_v0 = vld [vmem:[%s577_s2 + $0x18] sm:$0xff]  ;;  %v225_v1 = vld [vmem:[%s577_s2 + $0x10] sm:$0xff]  ;;  %s192_s5 = scalar_select %p191_p10, %s491_s19, 1  ;;  %v224_v2 = vld [vmem:[%s577_s2 + $0x8] sm:$0xff]  ;;  %vm199_vm0 = vcmask 130048   ;;  %vm228_vm1 = vcmask 261120  }
  0x14   : > { %244 = vmatpush.msra.mxu1 %v226_v0  ;;  %v196_v5 = vld [vmem:[%s576_s1] sm:$0xff]  ;;  %s395_s19 = sshra.s32 %s269_s9, 4  ;;  %s396_s19 = int_to_ptr.hbm [resolvable:$true] %s395_s19 }
  0x15   : > { %s341_s8 = sshll.u32 %s192_s5, 4  ;;  %v223_v6 = vld [vmem:[%s577_s2] sm:$0xff]  ;;  %p402_p0 = scmp.lt.s32.totalorder %s396_s19, %s579_s4 }
  0x16   : > { %245 = vmatpush.msra.mxu1 %v225_v1  ;;  %s195_s11 = scalar_lea.vmem %s575_s0, %s341_s8  ;;  %v227_v8 = vld [vmem:[%s578_s3] sm:$0xff]  ;;  %s266_s8 = sshll.u32 %s190_s7, 4  ;;  %s267_s8 = int_to_ptr.vmem [resolvable:$true] %s266_s8 }
  0x17   : > { %v198_v3 = vld [vmem:[%s195_s11 + $0x8] sm:$0xff]  ;;  %v197_v4 = vld [vmem:[%s195_s11] sm:$0xff]  ;;  %s397_s11 = scalar_lea.hbm %s396_s19, 8 }
  0x18   : > { %246 = vmatpush.msra.mxu1 %v224_v2  ;;  %217 = vmatpush.msra.mxu0 %v198_v3  ;;  %p398_p11 = scmp.ne.s32.totalorder %s396_s19, %s397_s11  ;;  %p403_p1 = scmp.lt.s32.totalorder %s401_s14, %s397_s11 }
  0x1a   : > { %218 = vmatpush.msra.mxu0 %v197_v4  ;;  %247 = vmatpush.msra.mxu1 %v223_v6  ;;  %p399_p12 = pnand %p398_p11, %p508_p5  ;;  %p404_p2 = por %p403_p1, %p402_p0 }
  0x1b   : > { %335 = vmatmul.msk.f32.vlgmr.msra.gmra.mxu0 %vm199_vm0, %v196_v5 }
  0x1c   : > { %p400_p13 = pneg %p399_p12 }
  0x1e   : > { %p405_p3 = pnand %p404_p2, %p400_p13 }
  0x98   : > { %v220_v7 = vpop.f32.mrf.mxu0 }
  0x99   : > { %336 = vmatmul.msk.f32.vlgmr.msra.gmra.mxu1 %vm228_vm1, %v220_v7 }
 0x116   : > { %v249_v9 = vpop.f32.mrf.mxu1 }
 0x117   : > { %v250_v10 = vadd.f32 %v249_v9, %v227_v8 }
 0x119   : > { %252 = vst.msk [vmem:[%s190_s7] sm:$0xff] %vm199_vm0, %v250_v10 }
 0x11a   : > { %408 = shalt.err (!%p405_p3)
}
 0x11b   : > { %342 = dma.vmem_to_hbm [thread:$0]  (%p508_p5), %s267_s8, 128, %s269_s9, %s254_s10  }
 0x11c PF: > { %p348_p4 = scmp.ge.s32.totalorder %s443_s18, 2  ;;  %s280_s22 = sand.u32 1, %s431_s15  }
 0x11d   : > { %s281_s27 = scalar_lea.sflag [#allocation3], %s280_s22 }
 0x11e   : > { %p345_p7 = pnand %p348_p4, %p512_p6 }
 0x120   : > { %p346_p8 = pneg %p345_p7 }
 0x122   : > { %426 = dma.done.wait (%p346_p8), %s281_s27, 128  }
 0x123   : > { %428 = vsyncadd (%p346_p8), %s281_s27, 4294967168  ;;  %p14_p9 = scmp.ge.s32.totalorder %s495_s21, 4   ;;  %s582_s15 = smov %s435_s16 }
 0x124   : > { %s583_s16 = smov %s439_s17  ;;  %s584_s17 = smov %s506_s24 }
 0x125   : > { %s585_s18 = smov %s495_s21  ;;  %16 = sbr.rel (!%p14_p9) target bundleno = 3 (0x3), region = 71 }
 0x12a   :  { %287 = vsyncpa [#allocation3], 1 }
 0x12b   :  { %289 = vsyncpa [#allocation3 + $0x1], 1 }

</bundles_post_ra>
